<compile_context>
chip_gen: v7x
topology: tpu7x:2x2x1
jax: 0.10.0
libtpu: 0.0.40
codegen_flags: <defaults>
</compile_context>

<pallas_src>
import functools

import jax
import jax.numpy as jnp
from jax.experimental import pallas as pl
from jax.experimental.pallas import tpu as pltpu

LANE = 128  # num_classes padded up to one full lane row (lane-dense store)


# ----------------------------------------------------------------------------
# Pallas kernel: conv-as-matmul + ReLU + global-avg-pool + FC + softmax
# ----------------------------------------------------------------------------
def _dawn_model_kernel(patches_ref, cw_ref, cb_ref, fw_ref, fb_ref,
                       out_ref, acc_ref, *, inv_hw):
    s = pl.program_id(1)

    @pl.when(s == 0)
    def _():
        acc_ref[...] = jnp.zeros_like(acc_ref)

    # conv as lane-dense matmul: (Cout, 9Cin)bf16 @ (9Cin, CHUNK)bf16 -> f32
    h = jnp.dot(cw_ref[...], patches_ref[...],
                preferred_element_type=jnp.float32)
    h = jnp.maximum(h + cb_ref[...], 0.0)                 # bias + ReLU (f32)

    # partial global-average-pool: per-channel sum over this spatial chunk
    acc_ref[...] += jnp.sum(h, axis=-1, keepdims=True)    # (Cout, 1)

    @pl.when(s == pl.num_programs(1) - 1)
    def _():
        pooled = acc_ref[...] * inv_hw                    # (Cout, 1) f32
        # tiny FC as broadcast-multiply + sublane reduce (no transpose needed)
        logits = jnp.sum(pooled * fw_ref[...], axis=0, keepdims=True)
        logits = logits + fb_ref[...]                     # (1, LANE), pad=-1e30
        m = jnp.max(logits, axis=-1, keepdims=True)
        e = jnp.exp(logits - m)
        denom = jnp.sum(e, axis=-1, keepdims=True)
        probs = e * pl.reciprocal(denom, approx=True)
        out_ref[...] = probs.reshape(1, 1, LANE)


def _run_model_kernel(patches_t, conv_w_t, conv_b, fc_w_pad, fc_b_pad,
                      batch, hw, chunk):
    kkc, _total = patches_t.shape
    cout = conv_w_t.shape[0]
    num_chunks = hw // chunk

    kernel = functools.partial(_dawn_model_kernel, inv_hw=1.0 / hw)

    ins = (patches_t, conv_w_t, conv_b, fc_w_pad, fc_b_pad)
    bytes_accessed = sum(a.size * a.dtype.itemsize for a in ins) + batch * LANE * 4
    flops = 2 * cout * kkc * batch * hw + 2 * cout * LANE * batch

    grid_spec = pltpu.PrefetchScalarGridSpec(
        num_scalar_prefetch=0,
        grid=(batch, num_chunks),
        in_specs=[
            # spatial tiles of the transposed patches, pipelined along chunks
            pl.BlockSpec((kkc, chunk), lambda b, s: (0, b * num_chunks + s)),
            # weights / biases: constant index_map -> stay resident
            pl.BlockSpec((cout, kkc), lambda b, s: (0, 0)),
            pl.BlockSpec((cout, 1), lambda b, s: (0, 0)),
            pl.BlockSpec((cout, LANE), lambda b, s: (0, 0)),
            pl.BlockSpec((1, LANE), lambda b, s: (0, 0)),
        ],
        out_specs=pl.BlockSpec((1, 1, LANE), lambda b, s: (b, 0, 0)),
        scratch_shapes=[pltpu.VMEM((cout, 1), jnp.float32)],
    )
    return pl.pallas_call(
        kernel,
        out_shape=jax.ShapeDtypeStruct((batch, 1, LANE), jnp.float32),
        grid_spec=grid_spec,
        compiler_params=pltpu.CompilerParams(
            dimension_semantics=("parallel", "arbitrary"),
            vmem_limit_bytes=32 * 1024 * 1024),
        cost_estimate=pl.CostEstimate(
            flops=flops,
            transcendentals=batch * (LANE + 1),
            bytes_accessed=bytes_accessed),
    )(patches_t, conv_w_t, conv_b, fc_w_pad, fc_b_pad)


# ----------------------------------------------------------------------------
# Glue: transposed patch extraction, parameter layout, DAWN wrapper
# ----------------------------------------------------------------------------
def _extract_patches_t(x_nchw, kh=3, kw=3):
    """x: (B, C, H, W) -> transposed patches (kh*kw*C, B*H*W), 'same' pad 1.

    Built directly in the (ky, kx, ci) x (b, h, w) layout the kernel expects:
    only the tiny (9, B, C) leading axes get permuted; H*W stays contiguous.
    """
    b, c, h, w = x_nchw.shape
    xp = jnp.pad(x_nchw, ((0, 0), (0, 0), (1, 1), (1, 1)))
    cols = [xp[:, :, ky:ky + h, kx:kx + w]
            for ky in range(kh) for kx in range(kw)]
    patches = jnp.stack(cols, axis=0)                     # (9, B, C, H, W)
    patches = jnp.transpose(patches, (0, 2, 1, 3, 4))     # (9, C, B, H, W)
    return patches.reshape(kh * kw * c, b * h * w)        # (9*C, B*H*W)


def init_params(key, cin=4, cout=8, num_classes=10, k=3):
    """Deterministic synthetic parameters (PyTorch-shaped)."""
    k1, k2, k3, k4 = jax.random.split(key, 4)
    conv_w = jax.random.normal(k1, (cout, cin, k, k), jnp.float32) * 0.1   # OIHW
    conv_b = jax.random.normal(k2, (cout,), jnp.float32) * 0.1
    fc_w = jax.random.normal(k3, (num_classes, cout), jnp.float32) * 0.1   # (out,in)
    fc_b = jax.random.normal(k4, (num_classes,), jnp.float32) * 0.1
    return dict(conv_w=conv_w, conv_b=conv_b, fc_w=fc_w, fc_b=fc_b)


def original_model(x_nchw, params):
    """CNN classifier forward, hot path inside the Pallas kernel."""
    b, c, h, w = x_nchw.shape
    cout = params["conv_w"].shape[0]
    num_classes = params["fc_w"].shape[0]
    hw = h * w

    # spatial chunk size: lane-aligned, divides H*W (keeps per-batch pooling
    # segments intact when the chunk axis is tiled).
    chunk = min(hw, 2048)
    assert hw % chunk == 0 and chunk % 128 == 0, "spatial tile must be lane-aligned"

    # bf16 matmul operands (f32 accumulate inside the kernel)
    patches_t = _extract_patches_t(x_nchw).astype(jnp.bfloat16)      # (9C, BHW)
    # OIHW -> (co, ky, kx, ci) -> (Cout, 9*Cin)  (matches patch row order)
    conv_w_t = (jnp.transpose(params["conv_w"], (0, 2, 3, 1))
                .reshape(cout, -1).astype(jnp.bfloat16))
    conv_b = params["conv_b"].reshape(cout, 1).astype(jnp.float32)

    # FC weights padded to a lane-dense 128-wide head; pad bias = -1e30 so the
    # padded classes vanish in the softmax.
    fc_w_pad = jnp.zeros((cout, LANE), jnp.float32)
    fc_w_pad = fc_w_pad.at[:, :num_classes].set(params["fc_w"].T)
    fc_b_pad = jnp.full((1, LANE), -1e30, jnp.float32)
    fc_b_pad = fc_b_pad.at[0, :num_classes].set(params["fc_b"])

    out = _run_model_kernel(patches_t, conv_w_t, conv_b, fc_w_pad, fc_b_pad,
                            b, hw, chunk)                 # (B, 1, 128)
    return out[:, 0, :num_classes]


def dawn_forward(x, params, trigger_technique="default"):
    """JAX/Pallas equivalent of DAWN.forward."""
    if trigger_technique == "dawn":
        # TODO(synk): the DAWN branch (per-item HMAC-SHA256 hashing + host-side
        # random label substitution) has no Pallas/TPU equivalent; fall back to
        # the wrapped model's predictions.
        return original_model(x, params)
    return original_model(x, params)


# ----------------------------------------------------------------------------
# Pure-JAX reference for verification
# ----------------------------------------------------------------------------
def _reference(x_nchw, params):
    y = jax.lax.conv_general_dilated(
        x_nchw, params["conv_w"], window_strides=(1, 1), padding="SAME",
        dimension_numbers=("NCHW", "OIHW", "NCHW"))
    y = jnp.maximum(y + params["conv_b"][None, :, None, None], 0.0)
    pooled = jnp.mean(y, axis=(2, 3))                                # (B, Cout)
    logits = pooled @ params["fc_w"].T + params["fc_b"]
    return jax.nn.softmax(logits, axis=-1)


if __name__ == "__main__":
    key = jax.random.PRNGKey(0)
    kx, kp = jax.random.split(key)

    B, C, H, W = 2, 4, 16, 16
    x = jax.random.normal(kx, (B, C, H, W), jnp.float32)             # NCHW input
    params = init_params(kp, cin=C, cout=8, num_classes=10)

    out = dawn_forward(x, params, trigger_technique="default")
    out = jax.block_until_ready(out)

    ref = _reference(x, params)
    assert out.shape == (B, 10)
    # tolerance covers bf16 matmul operands + approximate reciprocal
    assert jnp.allclose(out, ref, atol=2e-3, rtol=2e-3), "mismatch vs reference"

    print("KERNEL_OK")
</pallas_src>

<mosaic_0001>
module attributes {stable_mosaic.version = 11 : i64} {
  func.func @_dawn_model_kernel(%arg0: i32, %arg1: i32, %arg2: memref<36x256xbf16, #tpu.memory_space<vmem>>, %arg3: memref<8x36xbf16, #tpu.memory_space<vmem>>, %arg4: memref<8x1xf32, #tpu.memory_space<vmem>>, %arg5: memref<8x128xf32, #tpu.memory_space<vmem>>, %arg6: memref<1x128xf32, #tpu.memory_space<vmem>>, %arg7: memref<1x1x128xf32, #tpu.memory_space<vmem>>, %arg8: memref<8x1xf32, #tpu.memory_space<vmem>>) attributes {dimension_semantics = [#tpu.dimension_semantics<parallel>, #tpu.dimension_semantics<arbitrary>], iteration_bounds = array<i64: 2, 1>, scalar_prefetch = 0 : i64, scratch_operands = 1 : i64, tpu.core_type = #tpu.core_type<tc>, window_params = [{transform_indices = @transform_0, window_bounds = array<i64: 36, 256>}, {pipeline_mode = #tpu.pipeline_mode<synchronous>, transform_indices = @transform_1, window_bounds = array<i64: 8, 36>}, {pipeline_mode = #tpu.pipeline_mode<synchronous>, transform_indices = @transform_2, window_bounds = array<i64: 8, 1>}, {pipeline_mode = #tpu.pipeline_mode<synchronous>, transform_indices = @transform_3, window_bounds = array<i64: 8, 128>}, {pipeline_mode = #tpu.pipeline_mode<synchronous>, transform_indices = @transform_4, window_bounds = array<i64: 1, 128>}, {transform_indices = @transform_5, window_bounds = array<i64: 1, 1, 128>}]} {
    %c0_i32 = arith.constant 0 : i32
    %0 = arith.cmpi eq, %arg1, %c0_i32 : i32
    %1 = arith.extui %0 : i1 to i32
    %c0_i32_0 = arith.constant 0 : i32
    %2 = arith.cmpi ne, %1, %c0_i32_0 : i32
    scf.if %2 {
      %cst_14 = arith.constant 0.000000e+00 : f32
      %19 = vector.broadcast %cst_14 : f32 to vector<8x1xf32>
      %c0_15 = arith.constant 0 : index
      %c0_16 = arith.constant 0 : index
      %20 = vector.load %arg8[%c0_15, %c0_16] : memref<8x1xf32, #tpu.memory_space<vmem>>, vector<8x1xf32>
      tpu.vector_store %arg8[%c0_15, %c0_16], %19 {strides = array<i32>} : memref<8x1xf32, #tpu.memory_space<vmem>>, vector<8x1xf32>,
    } else {
    }
    %c0 = arith.constant 0 : index
    %c0_1 = arith.constant 0 : index
    %3 = vector.load %arg3[%c0, %c0_1] : memref<8x36xbf16, #tpu.memory_space<vmem>>, vector<8x36xbf16>
    %c0_2 = arith.constant 0 : index
    %c0_3 = arith.constant 0 : index
    %4 = vector.load %arg2[%c0_2, %c0_3] : memref<36x256xbf16, #tpu.memory_space<vmem>>, vector<36x256xbf16>
    %cst = arith.constant dense<0.000000e+00> : vector<8x256xf32>
    %5 = tpu.matmul %3, %4, %cst {dimension_numbers = #tpu.dot_dimension_numbers<[1], [0], [0], [1], [0, 0, 1, 1], [], []>} : vector<8x36xbf16>, vector<36x256xbf16>, vector<8x256xf32> -> vector<8x256xf32>
    %c0_4 = arith.constant 0 : index
    %c0_5 = arith.constant 0 : index
    %6 = vector.load %arg4[%c0_4, %c0_5] : memref<8x1xf32, #tpu.memory_space<vmem>>, vector<8x1xf32>
    %7 = vector.broadcast %6 : vector<8x1xf32> to vector<8x256xf32>
    %8 = arith.addf %5, %7 : vector<8x256xf32>
    %cst_6 = arith.constant 0.000000e+00 : f32
    %9 = vector.broadcast %cst_6 : f32 to vector<8x256xf32>
    %10 = arith.maximumf %8, %9 : vector<8x256xf32>
    %c0_7 = arith.constant 0 : index
    %c0_8 = arith.constant 0 : index
    %11 = vector.load %arg8[%c0_7, %c0_8] : memref<8x1xf32, #tpu.memory_space<vmem>>, vector<8x1xf32>
    %cst_9 = arith.constant dense<0.000000e+00> : vector<8xf32>
    %12 = vector.multi_reduction <add>, %10, %cst_9 [1] : vector<8x256xf32> to vector<8xf32>
    %13 = vector.shape_cast %12 : vector<8xf32> to vector<8x1xf32>
    %14 = arith.addf %11, %13 : vector<8x1xf32>
    %c0_10 = arith.constant 0 : index
    %c0_11 = arith.constant 0 : index
    %15 = vector.load %arg8[%c0_10, %c0_11] : memref<8x1xf32, #tpu.memory_space<vmem>>, vector<8x1xf32>
    tpu.vector_store %arg8[%c0_10, %c0_11], %14 {strides = array<i32>} : memref<8x1xf32, #tpu.memory_space<vmem>>, vector<8x1xf32>,
    %c0_i32_12 = arith.constant 0 : i32
    %16 = arith.cmpi eq, %arg1, %c0_i32_12 : i32
    %17 = arith.extui %16 : i1 to i32
    %c0_i32_13 = arith.constant 0 : i32
    %18 = arith.cmpi ne, %17, %c0_i32_13 : i32
    scf.if %18 {
      %c0_14 = arith.constant 0 : index
      %c0_15 = arith.constant 0 : index
      %19 = vector.load %arg8[%c0_14, %c0_15] : memref<8x1xf32, #tpu.memory_space<vmem>>, vector<8x1xf32>
      %cst_16 = arith.constant 3.906250e-03 : f32
      %20 = vector.broadcast %cst_16 : f32 to vector<8x1xf32>
      %21 = arith.mulf %19, %20 : vector<8x1xf32>
      %c0_17 = arith.constant 0 : index
      %c0_18 = arith.constant 0 : index
      %22 = vector.load %arg5[%c0_17, %c0_18] : memref<8x128xf32, #tpu.memory_space<vmem>>, vector<8x128xf32>
      %23 = vector.broadcast %21 : vector<8x1xf32> to vector<8x128xf32>
      %24 = arith.mulf %23, %22 : vector<8x128xf32>
      %cst_19 = arith.constant dense<0.000000e+00> : vector<128xf32>
      %25 = vector.multi_reduction <add>, %24, %cst_19 [0] : vector<8x128xf32> to vector<128xf32>
      %26 = vector.shape_cast %25 : vector<128xf32> to vector<1x128xf32>
      %c0_20 = arith.constant 0 : index
      %c0_21 = arith.constant 0 : index
      %27 = vector.load %arg6[%c0_20, %c0_21] : memref<1x128xf32, #tpu.memory_space<vmem>>, vector<1x128xf32>
      %28 = arith.addf %26, %27 : vector<1x128xf32>
      %cst_22 = arith.constant dense<0xFF800000> : vector<1xf32>
      %29 = vector.multi_reduction <maximumf>, %28, %cst_22 [1] : vector<1x128xf32> to vector<1xf32>
      %30 = vector.shape_cast %29 : vector<1xf32> to vector<1x1xf32>
      %31 = vector.broadcast %30 : vector<1x1xf32> to vector<1x128xf32>
      %32 = arith.subf %28, %31 : vector<1x128xf32>
      %33 = math.exp %32 : vector<1x128xf32>
      %cst_23 = arith.constant dense<0.000000e+00> : vector<1xf32>
      %34 = vector.multi_reduction <add>, %33, %cst_23 [1] : vector<1x128xf32> to vector<1xf32>
      %35 = vector.shape_cast %34 : vector<1xf32> to vector<1x1xf32>
      %36 = tpu.reciprocal %35 {approx = true} : vector<1x1xf32> -> vector<1x1xf32>
      %37 = vector.broadcast %36 : vector<1x1xf32> to vector<1x128xf32>
      %38 = arith.mulf %33, %37 : vector<1x128xf32>
      %39 = vector.shape_cast %38 : vector<1x128xf32> to vector<1x1x128xf32>
      %c0_24 = arith.constant 0 : index
      %c0_25 = arith.constant 0 : index
      %c0_26 = arith.constant 0 : index
      %40 = vector.load %arg7[%c0_24, %c0_25, %c0_26] : memref<1x1x128xf32, #tpu.memory_space<vmem>>, vector<1x1x128xf32>
      tpu.vector_store %arg7[%c0_24, %c0_25, %c0_26], %39 {strides = array<i32>} : memref<1x1x128xf32, #tpu.memory_space<vmem>>, vector<1x1x128xf32>,
    } else {
    }
    return
  }
  func.func @transform_0(%arg0: i32, %arg1: i32) -> (i32, i32) {
    %c1_i32 = arith.constant 1 : i32
    %0 = arith.muli %arg0, %c1_i32 : i32
    %1 = arith.addi %0, %arg1 : i32
    %c0_i32 = arith.constant 0 : i32
    %c0_i32_0 = arith.constant 0 : i32
    return %c0_i32, %1 : i32, i32
  }
  func.func @transform_1(%arg0: i32, %arg1: i32) -> (i32, i32) {
    %c0_i32 = arith.constant 0 : i32
    %c0_i32_0 = arith.constant 0 : i32
    %c0_i32_1 = arith.constant 0 : i32
    return %c0_i32, %c0_i32_0 : i32, i32
  }
  func.func @transform_2(%arg0: i32, %arg1: i32) -> (i32, i32) {
    %c0_i32 = arith.constant 0 : i32
    %c0_i32_0 = arith.constant 0 : i32
    %c0_i32_1 = arith.constant 0 : i32
    return %c0_i32, %c0_i32_0 : i32, i32
  }
  func.func @transform_3(%arg0: i32, %arg1: i32) -> (i32, i32) {
    %c0_i32 = arith.constant 0 : i32
    %c0_i32_0 = arith.constant 0 : i32
    %c0_i32_1 = arith.constant 0 : i32
    return %c0_i32, %c0_i32_0 : i32, i32
  }
  func.func @transform_4(%arg0: i32, %arg1: i32) -> (i32, i32) {
    %c0_i32 = arith.constant 0 : i32
    %c0_i32_0 = arith.constant 0 : i32
    %c0_i32_1 = arith.constant 0 : i32
    return %c0_i32, %c0_i32_0 : i32, i32
  }
  func.func @transform_5(%arg0: i32, %arg1: i32) -> (i32, i32, i32) {
    %c0_i32 = arith.constant 0 : i32
    %c0_i32_0 = arith.constant 0 : i32
    %c0_i32_1 = arith.constant 0 : i32
    return %arg0, %c0_i32, %c0_i32_0 : i32, i32, i32
  }
}

</mosaic_0001>

<bundles_post_ra>
// kernel: tpu_custom_call.1
= control target key start
LH: loop header
LB: loop body
LE: loop exit
PB: predicated region body
PF: predicated region fallthrough
CT: control target
= control target key end

     0   :  { %10 = vsyncpa [#allocation4], 0  ;;  %s924_s0 = inlined_call_operand.hbm [shape: bf16[36,512], index: 0, kind: input, shape index: {}]   ;;  %s925_s1 = inlined_call_operand.vmem [shape: bf16[8,36], index: 1, kind: input, shape index: {}]   ;;  %s926_s2 = inlined_call_operand.vmem [shape: f32[8,1], index: 2, kind: input, shape index: {}]   ;;  %s927_s3 = inlined_call_operand.vmem [shape: f32[8,128], index: 3, kind: input, shape index: {}]   ;;  %s928_s4 = inlined_call_operand.vmem [shape: f32[1,128], index: 4, kind: input, shape index: {}]   ;;  %s929_s5 = inlined_call_operand.hbm [shape: f32[2,1,128], index: 5, kind: output, shape index: {}]  }
   0x1   :  { %12 = vsyncpa [#allocation4 + $0x1], 0 }
   0x2   :  { %13 = vsyncpa [#allocation5], 0 }
   0x3   :  { %15 = vsyncpa [#allocation5 + $0x1], 0  ;;  %s738_s18 = smov 0   ;;  %s740_s19 = smov 0  }
   0x4   :  { %s742_s20 = smov 0   ;;  %s744_s21 = smov 0  }
   0x5   :  { %s746_s22 = smov 0   ;;  %s748_s23 = smov 0  }
   0x6 LB: > { %s485_s24 = sadd.s32 4294967295, %s699_s23   ;;  %s486_s25 = sadd.s32 4294967294, %s699_s23   ;;  %s699_s23 = sphi %s748_s23, %s21_s23   ;;  %s695_s22 = sphi %s746_s22, %s943_s22   ;;  %s691_s21 = sphi %s744_s21, %s942_s21   ;;  %s687_s20 = sphi %s742_s20, %s941_s20   ;;  %s683_s19 = sphi %s740_s19, %s940_s19   ;;  %s679_s18 = sphi %s738_s18, %s939_s18  }
   0x7   : > { %s33_s26 = sadd.s32 1, %s695_s22  ;;  %s42_s27 = sadd.s32 1, %s687_s20 }
   0x8   : > { %p35_p0 = scmp.ge.s32.totalorder %s33_s26, 2  ;;  %p49_p1 = scmp.ne.s32.totalorder %s687_s20, %s683_s19 }
   0x9   : > { %p50_p2 = scmp.eq.s32.totalorder %s699_s23, 0  ;;  %p55_p3 = scmp.ne.s32.totalorder %s683_s19, %s679_s18 }
   0xa   : > { %s945_s26 = smov (%p35_p0, %s33_s26), 0  ;;  %p56_p5 = scmp.eq.s32.totalorder %s485_s24, 0 }
   0xb   : > { %p779_p4 = por %p50_p2, %p49_p1  ;;  %s39_s29 = ssub.s32 %s695_s22, %s945_s26 }
   0xc   : > { %p163_p6 = scmp.eq.s32.totalorder %s485_s24, 1  ;;  %p40_p7 = scmp.eq.s32.totalorder %s39_s29, 0 }
   0xd   : > { %p785_p8 = por %p56_p5, %p55_p3  ;;  %p169_p10 = scmp.eq.s32.totalorder %s486_s25, 1 }
   0xe   : > { %p789_p9 = por %p163_p6, %p49_p1  ;;  %p518_p13 = scmp.lt.s32.totalorder %s699_s23, 2 }
   0xf   : > { %s794_s7 = scalar_select %p40_p7, %s687_s20, %s42_s27  }
  0x10   : > { %s933_s6 = scalar_select %p789_p9, 1, 0 }
  0x11   : > { %p796_p11 = por %p169_p10, %p55_p3  ;;  %s201_s9 = sand.u32 1, %s687_s20  }
  0x12   : > { %s504_s10 = smul.u32 40, %s201_s9  ;;  %s503_s11 = sshll.u32 %s695_s22, 7 }
  0x13   : > { %s934_s8 = scalar_select %p796_p11, 1, 0 }
  0x14   : > { %p806_p0 = pnand %p518_p13, %p779_p4  ;;  %s813_s15 = scalar_lea.hbm %s924_s0, %s503_s11 }
  0x15   : > { %s205_s16 = scalar_lea.vmem [#allocation3], %s504_s10  ;;  %s817_s24 = scalar_lea.sflag [#allocation4], %s201_s9 }
  0x16   : > { %s213_s17 = sshll.u32 %s205_s16, 4  ;;  %s587_s25 = scalar_lea.hbm %s813_s15, 640  ;;  %s815_s17 = int_to_ptr.vmem [resolvable:$true] %s213_s17 }
  0x17   : > { %p588_p1 = scmp.ne.s32.totalorder %s813_s15, %s587_s25  ;;  %p589_p2 = pneg %p806_p0 }
  0x18   : > { %s592_s29 = scalar_lea.hbm %s924_s0, 1280  ;;  %p593_p5 = scmp.lt.u32.totalorder %s813_s15, %s924_s0 }
  0x19   : > { %p590_p3 = pnand %p589_p2, %p588_p1  ;;  %p594_p6 = scmp.lt.u32.totalorder %s592_s29, %s587_s25 }
  0x1a   : > { %p596_p10 = scmp.lt.u32.totalorder %s587_s25, %s813_s15 }
  0x1b   : > { %p591_p4 = pneg %p590_p3  ;;  %p595_p7 = por %p594_p6, %p593_p5 }
  0x1d   : > { %p597_p13 = por %p596_p10, %p595_p7 }
  0x1f   : > { %p598_p12 = pnand %p597_p13, %p591_p4 }
  0x21   : > { %601 = shalt.err (!%p598_p12)
}
  0x22   : > { %s602_s9 = scalar_lea.vmem %s815_s17, 640  ;;  %s701_s10 = smov [#allocation3]  }
  0x23   : > { %p603_p1 = scmp.ne.s32.totalorder %s815_s17, %s602_s9  ;;  %s607_s14 = sshll.u32 %s701_s10, 4  ;;  %s608_s14 = int_to_ptr.vmem [resolvable:$false] %s607_s14 }
  0x24   : > { %s609_s16 = scalar_lea.vmem %s608_s14, 1280  ;;  %p610_p9 = scmp.lt.s32.totalorder %s815_s17, %s608_s14 }
  0x25   : > { %p605_p3 = pnand %p603_p1, %p589_p2  ;;  %p611_p5 = scmp.lt.s32.totalorder %s609_s16, %s602_s9 }
  0x27   : > { %p606_p11 = pneg %p605_p3  ;;  %p612_p6 = por %p611_p5, %p610_p9 }
  0x29   : > { %p613_p7 = pnand %p612_p6, %p606_p11 }
  0x2b   : > { %616 = shalt.err (!%p613_p7)
}
  0x2c   : > { %s702_s25 = smov 256   ;;  %s703_s27 = smov 128  }
  0x2d   : > { %s704_s28 = smov 8   ;;  %p491_p12 = scmp.ge.s32.totalorder %s699_s23, 1 }
  0x2e   : > { %513 = dma.hbm_to_vmem [thread:$0]  (!%p806_p0), %s813_s15, 640, %s815_s17, %s817_s24, %s702_s25, %s703_s27, %s704_s28  }
  0x2f   : > { %p221_p2 = scmp.lt.s32.totalorder %s699_s23, 3 }
  0x31   : > { %p222_p4 = pnand %p491_p12, %p221_p2 }
  0x32   : > { %s848_s29 = sand.u32 (!%p222_p4), 1, %s683_s19  }
  0x33   : > { %225 = sbr.rel (%p222_p4) target bundleno = 918 (0x396), region = 40  ;;  %s228_s13 = scalar_lea.sflag (!%p222_p4), [#allocation4], %s848_s29 }
  0x34   : > { %s505_s11 = smul.u32 (!%p222_p4), 40, %s848_s29 }
  0x36   : > { %s231_s9 = scalar_lea.vmem (!%p222_p4), [#allocation3], %s505_s11 }
  0x3a   : > { %670 = dma.done.wait (%p785_p8), %s228_s13, 640  }
  0x3b   : > { %672 = vsyncadd (%p785_p8), %s228_s13, 4294966656  ;;  %v705_v0 = vmov 0   ;;  %v575_v1 = vld [vmem:[%s231_s9 + $0x4] ss:$8 sps:$4 sm:$0xff]   ;;  %v577_v2 = vld [vmem:[%s231_s9] ss:$8 sps:$4 sm:$0xff]  }
  0x3c   : > { %346 = vmatprep.mubr.bf16.mxu0 %v705_v0  ;;  %573 = vset.pattern.permute.xlu0 %v705_v0  ;;  %v578_v3 = vld [vmem:[%s231_s9 + $0x14] ss:$8 sps:$4 sm:$0xff]   ;;  %v271_v4 = vld [vmem:[%s231_s9 + $0x20] sm:$0x33]  ;;  %v580_v5 = vld [vmem:[%s231_s9 + $0x10] ss:$8 sps:$4 sm:$0xff]  }
  0x3d   : > { %574 = vset.pattern.permute.xlu1 %v705_v0  ;;  %314 = vmatprep.subr.bf16.mxu0 %v575_v1  ;;  %v272_v6 = vld [vmem:[%s926_s2] sm:$0xff]  ;;  %v497_v7 = vcombine.high %v271_v4, %v271_v4  ;;  %v496_v8 = vcombine.low %v271_v4, %v271_v4  ;;  %vm307_vm0 = vcmask 1041408   ;;  %vm303_vm1 = vcmask 293888   ;;  %s500_s25 = sshll.u32 %s691_s21, 4  ;;  %s256_s27 = scalar_lea.vmem [#allocation6], %s848_s29 }
  0x3e   : > { %315 = vmatpush1.bf16.msra.mxu0 %v577_v2  ;;  %275 = vperm.xlu0 %573, %v272_v6   ;;  %v266_v10 = vld [vmem:[%s925_s1] sm:$0xf]  ;;  %vm264_vm2 = vcmask 7168   ;;  %v706_v11 = vmov 0.0   ;;  %vm384_vm3 = vcmask 1040384   ;;  %s410_s28 = sshll.u32 %s256_s27, 4  ;;  %s875_s9 = scalar_lea.hbm %s929_s5, %s500_s25  ;;  %s877_s28 = int_to_ptr.vmem [resolvable:$true] %s410_s28 }
  0x3f   : > { %316 = vmatprep.subr.bf16.mxu0 %v578_v3  ;;  %v309_v9 = vsel %vm307_vm0, %v496_v8, 0  ;;  %265 = vst.msk [vmem:[#allocation2] sm:$0xff] %vm264_vm2, %v706_v11  ;;  %v369_v27 = vld [vmem:[%s927_s3] sm:$0xff]  ;;  %s398_s12 = scalar_lea.sflag [#allocation5], %s848_s29  ;;  %s617_s15 = scalar_lea.vmem %s877_s28, 16 }
  0x40   : > { %v382_v35 = vld [vmem:[%s928_s4] sm:$0x1]  ;;  %p618_p8 = scmp.ne.s32.totalorder %s877_s28, %s617_s15  ;;  %p936_p9 = scmp.ne.s32.totalorder %s933_s6, 0 }
  0x41   : > { %s707_s21 = smov [#allocation6]  }
  0x42   : > { %317 = vmatpush1.bf16.msra.mxu0 %v580_v5  ;;  %p619_p11 = pnand %p618_p8, %p936_p9  ;;  %s621_s30 = sshll.u32 %s707_s21, 4  ;;  %s622_s30 = int_to_ptr.vmem [resolvable:$false] %s621_s30 }
  0x43   : > { %498 = vmatprep.subr.msk.bf16.mxu0 %vm307_vm0, %v497_v7  ;;  %s623_s17 = scalar_lea.vmem %s622_s30, 32  ;;  %p624_p10 = scmp.lt.s32.totalorder %s877_s28, %s622_s30 }
  0x44   : > { %p620_p0 = pneg %p619_p11  ;;  %p625_p13 = scmp.lt.s32.totalorder %s623_s17, %s617_s15 }
  0x46   : > { %319 = vmatpush1.bf16.msra.mxu0 %v309_v9  ;;  %v357_v22 = vld [vmem:[#allocation2] sm:$0xff]  ;;  %p626_p1 = por %p625_p13, %p624_p10 }
  0x48   : > { %p627_p3 = pnand %p626_p1, %p620_p0 }
  0x49   : > { %499 = vmatmul.mubr.msk.bf16.vlgmr.msra.gmra.mrb[0].mxu0 %vm303_vm1, %v266_v10 }
  0xbd   : > { %v276_v12 = vpop.permute.xlu0 %275 }
 0x11c   : > { %v348_v13 = vpop.f32.mrb[0].mxu0 }
 0x11d   : > { %v349_v14 = vadd.f32 %v348_v13, %v276_v12  ;;  %v350_v15 = vpop.f32.mrb[1].mxu0 }
 0x11e   : > { %v351_v16 = vadd.f32 %v350_v15, %v276_v12  ;;  %v352_v17 = vpop.f32.mrb[2].mxu0 }
 0x11f   : > { %v355_v18 = vmax.f32 %v349_v14, 0.0  ;;  %v353_v19 = vpop.f32.mrb[3].mxu0 }
 0x120   : > { %v356_v20 = vmax.f32 %v351_v16, 0.0 }
 0x122   : > { %v358_v21 = vadd.f32 %v356_v20, %v355_v18 }
 0x124   : > { %359 = vadd.xlane.f32.xlu0 %v358_v21 }
 0x1b1   : > { %v360_v23 = vpop.xlane.xlu0 %359 }
 0x1b2   : > { %v361_v24 = vadd.f32 %v360_v23, %v357_v22 }
 0x1b4   : > { %363 = vst.msk [vmem:[#allocation2] sm:$0xff] %vm264_vm2, %v361_v24 }
 0x1bb   : > { %v367_v25 = vld [vmem:[#allocation2] sm:$0xff] }
 0x1bc   : > { %v368_v26 = vmul.f32 0.00390625, %v367_v25 }
 0x1be   : > { %372 = vperm.xlu1 %574, %v368_v26  }
 0x23d   : > { %v373_v28 = vpop.permute.xlu1 %372 }
 0x23e   : > { %v375_v29 = vmul.f32 %v373_v28, %v369_v27 }
 0x240   : > { %v376_v30 = vrot.slane %v375_v29, 4 }
 0x242   : > { %v377_v31 = vadd.f32 %v376_v30, %v375_v29 }
 0x244   : > { %v378_v32 = vrot.slane %v377_v31, 2 }
 0x246   : > { %v379_v33 = vadd.f32 %v378_v32, %v377_v31 }
 0x248   : > { %v380_v34 = vrot.slane %v379_v33, 1 }
 0x24a   : > { %v381_v36 = vadd.f32 %v380_v34, %v379_v33 }
 0x24c   : > { %v383_v37 = vadd.f32 %v382_v35, %v381_v36 }
 0x24e   : > { %v385_v38 = vsel %vm384_vm3, %v383_v37, -inf }
 0x24f   : > { %386 = vmax.xlane.f32.xlu1 %v385_v38 }
 0x2dc   : > { %v387_v39 = vpop.xlane.xlu1 %386 }
 0x2dd   : > { %v388_v40 = vsub.f32 %v383_v37, %v387_v39 }
 0x2df   : > { %v389_v41 = vmul.f32 1.442695, %v388_v40 }
 0x2e1   : > { %583 = vpow2.f32 %v389_v41 }
 0x2eb   : > { %v584_v42 = vpop.eup %583 }
 0x2ec   : > { %v391_v43 = vsel %vm384_vm3, %v584_v42, 0.0 }
 0x2ed   : > { %392 = vadd.xlane.f32.xlu0 %v391_v43 }
 0x37a   : > { %v393_v44 = vpop.xlane.xlu0 %392 }
 0x37b   : > { %585 = vrcp.f32 %v393_v44 }
 0x385   : > { %v586_v45 = vpop.eup %585 }
 0x386   : > { %v395_v46 = vmul.f32 %v586_v45, %v584_v42 }
 0x388   : > { %396 = vst [vmem:[%s256_s27] sm:$0x1] %v395_v46 }
 0x389   : > { %630 = shalt.err (!%p627_p3)
}
 0x38a   : > { %s631_s29 = scalar_lea.hbm %s875_s9, 16  ;;  %s635_s14 = scalar_lea.hbm %s929_s5, 32 }
 0x38b   : > { %p632_p5 = scmp.ne.s32.totalorder %s875_s9, %s631_s29  ;;  %p636_p12 = scmp.lt.u32.totalorder %s875_s9, %s929_s5 }
 0x38c   : > { %p637_p2 = scmp.lt.u32.totalorder %s635_s14, %s631_s29  ;;  %p639_p8 = scmp.lt.u32.totalorder %s631_s29, %s875_s9 }
 0x38d   : > { %p633_p6 = pnand %p632_p5, %p936_p9 }
 0x38e   : > { %p638_p4 = por %p637_p2, %p636_p12 }
 0x38f   : > { %p634_p7 = pneg %p633_p6 }
 0x390   : > { %p640_p11 = por %p639_p8, %p638_p4 }
 0x392   : > { %p641_p0 = pnand %p640_p11, %p634_p7 }
 0x394   : > { %644 = shalt.err (!%p641_p0)
}
 0x395   : > { %508 = dma.vmem_to_hbm [thread:$0]  (%p936_p9), %s877_s28, 16, %s875_s9, %s398_s12  }
 0x396 PF: > { %s422_s27 = sand.u32 1, %s679_s18   ;;  %p937_p10 = scmp.ne.s32.totalorder %s934_s8, 0 }
 0x397   : > { %p938_p13 = scmp.ge.s32.totalorder %s699_s23, 2  ;;  %s423_s11 = scalar_lea.sflag [#allocation5], %s422_s27 }
 0x399   : > { %p515_p1 = pnand %p938_p13, %p937_p10 }
 0x39b   : > { %674 = dma.done.wait (!%p515_p1), %s423_s11, 16  }
 0x39c   : > { %676 = vsyncadd (!%p515_p1), %s423_s11, 4294967280  ;;  %s21_s23 = sadd.s32 1, %s699_s23   ;;  %s939_s18 = smov %s683_s19 }
 0x39d   : > { %p18_p3 = scmp.ge.s32.totalorder %s21_s23, 4   ;;  %s940_s19 = smov %s687_s20 }
 0x39e   : > { %s941_s20 = smov %s794_s7  ;;  %s942_s21 = smov %s695_s22 }
 0x39f   : > { %s943_s22 = smov %s945_s26  ;;  %20 = sbr.rel (!%p18_p3) target bundleno = 6 (0x6), region = 93 }
 0x3a6   :  { %427 = vsyncpa [#allocation4], 1 }
 0x3a7   :  { %429 = vsyncpa [#allocation4 + $0x1], 1 }
 0x3a8   :  { %430 = vsyncpa [#allocation5], 1 }
 0x3a9   :  { %432 = vsyncpa [#allocation5 + $0x1], 1 }

</bundles_post_ra>
